<compile_context>
chip_gen: v5e
topology: v5e:2x2
jax: 0.10.0
libtpu: 0.0.40
codegen_flags: <defaults>
</compile_context>

<pallas_src>
import math

import jax
import jax.numpy as jnp
from jax.experimental import pallas as pl
from jax.experimental.pallas import tpu as pltpu


def _round_up(x, m):
    return (x + m - 1) // m * m


def _largest_divisor_tile(dim, tmax, align):
    """Largest multiple of `align` that divides `dim` and is <= tmax.

    `dim` is always a multiple of `align` here, so this terminates with >= align.
    """
    if dim <= tmax:
        return dim
    t = tmax - (tmax % align)
    while t >= align:
        if dim % t == 0:
            return t
        t -= align
    return align


# ----------------------------------------------------------------------------
# Pallas kernels
# ----------------------------------------------------------------------------

def _linear_kernel_acc(x_ref, w_ref, b_ref, o_ref, acc_ref):
    """Multi-K-step path: f32 VMEM accumulator, bias fused into the epilogue."""
    k = pl.program_id(2)

    @pl.when(k == 0)
    def _():
        acc_ref[...] = jnp.zeros_like(acc_ref)

    acc_ref[...] += jnp.dot(x_ref[...], w_ref[...],
                            preferred_element_type=jnp.float32)

    @pl.when(k == pl.num_programs(2) - 1)
    def _():
        o_ref[...] = (acc_ref[...] + b_ref[...]).astype(o_ref.dtype)


def _linear_kernel_single_k(x_ref, w_ref, b_ref, o_ref):
    """Single-K-step fast path: no accumulator scratch, write output directly."""
    o_ref[...] = (jnp.dot(x_ref[...], w_ref[...],
                          preferred_element_type=jnp.float32)
                  + b_ref[...]).astype(o_ref.dtype)


# ----------------------------------------------------------------------------
# Wrapper
# ----------------------------------------------------------------------------

def linear_pallas(x, w_t, b2d, out_dim, *, tm_max=2048, tn_max=512, tk_max=1024):
    """y = x @ w_t + b.

    x    : (..., K)   activations (K = true input_dim)
    w_t  : (Kp, Np)   weight, transposed AND zero-padded once at init
    b2d  : (1, Np)    bias, zero-padded + f32, shaped for lane-dense broadcast
    """
    *lead, K = x.shape
    Kp, Np = w_t.shape
    x2 = x.reshape(-1, K)
    M = x2.shape[0]

    # ---- tile selection ------------------------------------------------------
    tk = _largest_divisor_tile(Kp, tk_max, 128)
    tn = _largest_divisor_tile(Np, tn_max, 128)

    Mp = _round_up(M, 8)
    if Mp <= tm_max:
        tm = Mp                        # stream the weight exactly once over M
    else:
        tm = tm_max
        Mp = _round_up(M, tm)

    # Megacore (v7x, 2 TCs): guarantee >= 2 blocks on a "parallel" axis when possible.
    gm, gn = Mp // tm, Np // tn
    if gm == 1 and gn == 1:
        if tm % 16 == 0:
            tm //= 2
        elif tn % 256 == 0:
            tn //= 2
    gm, gn, gk = Mp // tm, Np // tn, Kp // tk

    # ---- activation padding (only per-call pad; weight/bias pre-padded) -----
    if (Mp, Kp) != (M, K):
        x2 = jnp.pad(x2, ((0, Mp - M), (0, Kp - K)))

    # ---- pallas_call ---------------------------------------------------------
    in_specs = [
        pl.BlockSpec((tm, tk), lambda i, j, k: (i, k)),
        pl.BlockSpec((tk, tn), lambda i, j, k: (k, j)),
        pl.BlockSpec((1, tn), lambda i, j, k: (0, j)),
    ]
    out_specs = pl.BlockSpec((tm, tn), lambda i, j, k: (i, j))

    cost = pl.CostEstimate(
        flops=2 * Mp * Np * Kp,
        transcendentals=0,
        bytes_accessed=4 * (Mp * Kp + Kp * Np + Mp * Np),
    )

    if gk == 1:
        kernel = _linear_kernel_single_k
        grid_spec = pltpu.PrefetchScalarGridSpec(
            num_scalar_prefetch=0, grid=(gm, gn, 1),
            in_specs=in_specs, out_specs=out_specs)
    else:
        kernel = _linear_kernel_acc
        grid_spec = pltpu.PrefetchScalarGridSpec(
            num_scalar_prefetch=0, grid=(gm, gn, gk),
            in_specs=in_specs, out_specs=out_specs,
            scratch_shapes=[pltpu.VMEM((tm, tn), jnp.float32)])

    out = pl.pallas_call(
        kernel,
        out_shape=jax.ShapeDtypeStruct((Mp, Np), x.dtype),
        grid_spec=grid_spec,
        compiler_params=pltpu.CompilerParams(
            dimension_semantics=("parallel", "parallel", "arbitrary"),
            vmem_limit_bytes=48 * 1024 * 1024,   # fits v7x's 64 MiB with headroom
        ),
        cost_estimate=cost,
    )(x2, w_t, b2d)

    if Mp != M or Np != out_dim:
        out = out[:M, :out_dim]
    return out.reshape(*lead, out_dim)


# ----------------------------------------------------------------------------
# Expert module (nn.Linear) parameters + forward
# ----------------------------------------------------------------------------

def init_expert_params(key, input_dim, out_dim, dtype=jnp.float32):
    """Mirrors torch.nn.Linear init U(-1/sqrt(fan_in), +); stores the weight
    pre-transposed and pre-padded to 128-aligned (Kp, Np) so the forward pass
    does zero per-call work on the weight/bias."""
    kw, kb = jax.random.split(key)
    bound = 1.0 / math.sqrt(input_dim)
    w = jax.random.uniform(kw, (out_dim, input_dim), dtype, -bound, bound)
    b = jax.random.uniform(kb, (out_dim,), dtype, -bound, bound)

    Kp = _round_up(input_dim, 128)
    Np = _round_up(out_dim, 128)
    w_t = jnp.pad(jnp.asarray(w.T), ((0, Kp - input_dim), (0, Np - out_dim)))
    b2d = jnp.pad(b, (0, Np - out_dim)).reshape(1, Np).astype(jnp.float32)
    return {"w_t": w_t, "b": b2d, "in_dim": input_dim, "out_dim": out_dim}


def expert_forward(params, x):
    """Expert.forward(x) == self.fc(x)."""
    return linear_pallas(x, params["w_t"], params["b"], params["out_dim"])


# ----------------------------------------------------------------------------
if __name__ == "__main__":
    key = jax.random.PRNGKey(0)
    k1, k2, k3, k4, k5, k6 = jax.random.split(key, 6)

    def ref_linear(params, x):
        IN, OUT = params["in_dim"], params["out_dim"]
        return x @ params["w_t"][:IN, :OUT] + params["b"][0, :OUT]

    # --- small shape (B=2, T=8, input_dim=32, out=64); single-K fast path -----
    B, T, IN_DIM, OUT_DIM = 2, 8, 32, 64
    params = init_expert_params(k1, IN_DIM, OUT_DIM)
    x = jax.random.normal(k2, (B, T, IN_DIM), dtype=jnp.float32)

    y = expert_forward(params, x)
    jax.block_until_ready(y)
    assert y.shape == (B, T, OUT_DIM), y.shape
    y_ref = ref_linear(params, x)
    assert jnp.allclose(y, y_ref, atol=1e-3, rtol=1e-3), \
        float(jnp.max(jnp.abs(y - y_ref)))

    # --- moderate, non-aligned shape (exercises padding + tile split) ---------
    B2, T2, IN2, OUT2 = 2, 300, 200, 160
    params2 = init_expert_params(k3, IN2, OUT2)
    x2 = jax.random.normal(k4, (B2, T2, IN2), dtype=jnp.float32)

    y2 = expert_forward(params2, x2)
    jax.block_until_ready(y2)
    assert y2.shape == (B2, T2, OUT2), y2.shape
    y2_ref = ref_linear(params2, x2)
    assert jnp.allclose(y2, y2_ref, atol=2e-3, rtol=1e-3), \
        float(jnp.max(jnp.abs(y2 - y2_ref)))

    # --- larger K to exercise the multi-K accumulator path --------------------
    B3, T3, IN3, OUT3 = 2, 256, 1536, 256
    params3 = init_expert_params(k5, IN3, OUT3)
    x3 = jax.random.normal(k6, (B3, T3, IN3), dtype=jnp.float32)

    y3 = expert_forward(params3, x3)
    jax.block_until_ready(y3)
    assert y3.shape == (B3, T3, OUT3), y3.shape
    y3_ref = ref_linear(params3, x3)
    assert jnp.allclose(y3, y3_ref, atol=2e-3, rtol=1e-3), \
        float(jnp.max(jnp.abs(y3 - y3_ref)))

    print("KERNEL_OK")
</pallas_src>

<mosaic_0001>
module attributes {stable_mosaic.version = 11 : i64} {
  func.func @_linear_kernel_single_k(%arg0: i32, %arg1: i32, %arg2: i32, %arg3: memref<8x128xf32, #tpu.memory_space<vmem>>, %arg4: memref<128x128xf32, #tpu.memory_space<vmem>>, %arg5: memref<1x128xf32, #tpu.memory_space<vmem>>, %arg6: memref<8x128xf32, #tpu.memory_space<vmem>>) attributes {dimension_semantics = [#tpu.dimension_semantics<parallel>, #tpu.dimension_semantics<parallel>, #tpu.dimension_semantics<arbitrary>], iteration_bounds = array<i64: 2, 1, 1>, scalar_prefetch = 0 : i64, scratch_operands = 0 : i64, tpu.core_type = #tpu.core_type<tc>, window_params = [{transform_indices = @transform_0, window_bounds = array<i64: 8, 128>}, {transform_indices = @transform_1, window_bounds = array<i64: 128, 128>}, {transform_indices = @transform_2, window_bounds = array<i64: 1, 128>}, {transform_indices = @transform_3, window_bounds = array<i64: 8, 128>}]} {
    %c0 = arith.constant 0 : index
    %c0_0 = arith.constant 0 : index
    %0 = vector.load %arg3[%c0, %c0_0] : memref<8x128xf32, #tpu.memory_space<vmem>>, vector<8x128xf32>
    %c0_1 = arith.constant 0 : index
    %c0_2 = arith.constant 0 : index
    %1 = vector.load %arg4[%c0_1, %c0_2] : memref<128x128xf32, #tpu.memory_space<vmem>>, vector<128x128xf32>
    %cst = arith.constant dense<0.000000e+00> : vector<8x128xf32>
    %2 = tpu.matmul %0, %1, %cst {dimension_numbers = #tpu.dot_dimension_numbers<[1], [0], [0], [1], [0, 0, 1, 1], [], []>} : vector<8x128xf32>, vector<128x128xf32>, vector<8x128xf32> -> vector<8x128xf32>
    %c0_3 = arith.constant 0 : index
    %c0_4 = arith.constant 0 : index
    %3 = vector.load %arg5[%c0_3, %c0_4] : memref<1x128xf32, #tpu.memory_space<vmem>>, vector<1x128xf32>
    %4 = vector.broadcast %3 : vector<1x128xf32> to vector<8x128xf32>
    %5 = arith.addf %2, %4 : vector<8x128xf32>
    %c0_5 = arith.constant 0 : index
    %c0_6 = arith.constant 0 : index
    %6 = vector.load %arg6[%c0_5, %c0_6] : memref<8x128xf32, #tpu.memory_space<vmem>>, vector<8x128xf32>
    tpu.vector_store %arg6[%c0_5, %c0_6], %5 {strides = array<i32>} : memref<8x128xf32, #tpu.memory_space<vmem>>, vector<8x128xf32>,
    return
  }
  func.func @transform_0(%arg0: i32, %arg1: i32, %arg2: i32) -> (i32, i32) {
    %c0_i32 = arith.constant 0 : i32
    return %arg0, %arg2 : i32, i32
  }
  func.func @transform_1(%arg0: i32, %arg1: i32, %arg2: i32) -> (i32, i32) {
    %c0_i32 = arith.constant 0 : i32
    return %arg2, %arg1 : i32, i32
  }
  func.func @transform_2(%arg0: i32, %arg1: i32, %arg2: i32) -> (i32, i32) {
    %c0_i32 = arith.constant 0 : i32
    %c0_i32_0 = arith.constant 0 : i32
    return %c0_i32, %arg1 : i32, i32
  }
  func.func @transform_3(%arg0: i32, %arg1: i32, %arg2: i32) -> (i32, i32) {
    %c0_i32 = arith.constant 0 : i32
    return %arg0, %arg1 : i32, i32
  }
}

</mosaic_0001>

<bundles_post_ra>
// kernel: tpu_custom_call.1
= control target key start
LH: loop header
LB: loop body
LE: loop exit
PB: predicated region body
PF: predicated region fallthrough
CT: control target
= control target key end

     0   :  { %8 = vsyncpa [#allocation3], 0  ;;  %s839_s0 = inlined_call_operand.hbm [shape: f32[16,128], index: 0, kind: input, shape index: {}]   ;;  %s840_s1 = inlined_call_operand.hbm [shape: f32[128,128], index: 1, kind: input, shape index: {}]   ;;  %s841_s2 = inlined_call_operand.vmem [shape: f32[1,128], index: 2, kind: input, shape index: {}]   ;;  %s842_s3 = inlined_call_operand.hbm [shape: f32[16,128], index: 3, kind: output, shape index: {}]  }
   0x1   :  { %10 = vsyncpa [#allocation3 + $0x1], 0 }
   0x2   :  { %11 = vsyncpa [#allocation6], 0 }
   0x3   :  { %12 = vsyncpa [#allocation4], 0 }
   0x4   :  { %14 = vsyncpa [#allocation4 + $0x1], 0  ;;  %s686_s12 = smov 0   ;;  %s688_s13 = smov 0  }
   0x5   :  { %s690_s14 = smov 0   ;;  %s692_s15 = smov 0  }
   0x6   :  { %s694_s16 = smov 0   ;;  %s696_s17 = smov 0  }
   0x7 LB: > { %s423_s18 = sadd.s32 4294967295, %s661_s17   ;;  %p425_p0 = scmp.ge.s32.totalorder %s661_s17, 1  ;;  %s661_s17 = sphi %s696_s17, %s20_s17   ;;  %s657_s16 = sphi %s694_s16, %s853_s16   ;;  %s653_s15 = sphi %s692_s15, %s852_s15   ;;  %s649_s14 = sphi %s690_s14, %s851_s14   ;;  %s645_s13 = sphi %s688_s13, %s850_s13   ;;  %s641_s12 = sphi %s686_s12, %s849_s12  }
   0x8   : > { %p718_p1 = scmp.eq.s32.totalorder %s423_s18, 0  ;;  %p154_p2 = scmp.lt.s32.totalorder %s661_s17, 3 }
   0x9   : > { %s169_s22 = sshll.u32 %s840_s1, 4  ;;  %s663_s24 = smov [#allocation5]   ;;  %s170_s22 = int_to_ptr.hbm [resolvable:$true] %s169_s22 }
   0xa   : > { %p726_p3 = pnand %p425_p0, %p154_p2  ;;  %s171_s25 = sshll.u32 %s663_s24, 4  ;;  %s172_s25 = int_to_ptr.vmem [resolvable:$true] %s171_s25 }
   0xb   : > { %p428_p6 = scmp.ge.s32.totalorder %s661_s17, 2  ;;  %s664_s26 = smov 128  }
   0xc   : > { %p447_p4 = pneg %p726_p3  ;;  %s665_s27 = smov 8  }
   0xd   : > { %s424_s28 = sadd.s32 4294967294, %s661_s17   ;;  %s39_s29 = sadd.s32 1, %s657_s16 }
   0xe   : > { %p448_p5 = pnand %p447_p4, %p718_p1  ;;  %s48_s30 = sadd.s32 1, %s649_s14 }
   0xf   : > { %p41_p7 = scmp.ge.s32.totalorder %s39_s29, 2  ;;  %p55_p8 = scmp.ne.s32.totalorder %s649_s14, %s645_s13 }
  0x10   : > { %450 = dma.hbm_to_vmem [thread:$0]  (!%p448_p5), %s170_s22, 2048, %s172_s25, [#allocation6], %s664_s26, %s664_s26, %s665_s27  }
  0x11   : > { %p56_p9 = scmp.eq.s32.totalorder %s661_s17, 0  ;;  %p61_p10 = scmp.ne.s32.totalorder %s645_s13, %s641_s12 }
  0x12   : > { %s855_s29 = smov (%p41_p7, %s39_s29), 0  ;;  %p141_p13 = scmp.eq.s32.totalorder %s423_s18, 1 }
  0x13   : > { %p745_p11 = por %p56_p9, %p55_p8  ;;  %p751_p12 = por %p718_p1, %p61_p10 }
  0x14   : > { %s43_s6 = ssub.s32 %s657_s16, %s855_s29  ;;  %p147_p2 = scmp.eq.s32.totalorder %s424_s28, 1 }
  0x15   : > { %p46_p0 = scmp.eq.s32.totalorder %s43_s6, 0  ;;  %p757_p4 = por %p141_p13, %p55_p8 }
  0x16   : > { %p460_p5 = scmp.lt.s32.totalorder %s661_s17, 2  ;;  %p765_p7 = por %p147_p2, %p61_p10 }
  0x17   : > { %s763_s8 = scalar_select %p46_p0, %s649_s14, %s48_s30  }
  0x18   : > { %s191_s10 = sand.u32 1, %s649_s14   ;;  %s430_s20 = sshll.u32 %s657_s16, 3 }
  0x19   : > { %s429_s11 = sshll.u32 %s191_s10, 3  ;;  %s200_s18 = scalar_lea.hbm %s839_s0, %s430_s20 }
  0x1a   : > { %s195_s24 = scalar_lea.vmem [#allocation2], %s429_s11  ;;  %s202_s26 = sshll.u32 %s200_s18, 4  ;;  %s203_s26 = int_to_ptr.hbm [resolvable:$true] %s202_s26 }
  0x1b   : > { %s204_s25 = sshll.u32 %s195_s24, 4  ;;  %p452_p8 = pnand %p460_p5, %p745_p11  ;;  %s205_s25 = int_to_ptr.vmem [resolvable:$true] %s204_s25 }
  0x1c   : > { %s192_s27 = scalar_lea.sflag [#allocation3], %s191_s10  ;;  %213 = sbr.rel (%p726_p3) target bundleno = 199 (0xc7), region = 32 }
  0x1d   : > { %454 = dma.hbm_to_vmem [thread:$0]  (!%p452_p8), %s203_s26, 128, %s205_s25, %s192_s27  }
  0x1e   : > { %s779_s28 = sand.u32 (!%p726_p3), 1, %s645_s13  }
  0x1f   : > { %s432_s30 = sshll.u32 (!%p726_p3), %s779_s28, 3  ;;  %s216_s6 = scalar_lea.sflag (!%p726_p3), [#allocation3], %s779_s28 }
  0x20   : > { %s785_s11 = scalar_lea.vmem (!%p726_p3), [#allocation2], %s432_s30 }
  0x21   : > { %628 = dma.done.wait (%p751_p12), %s216_s6, 128  }
  0x22   : > { %630 = vsyncadd (%p751_p12), %s216_s6, 4294967168 }
  0x23   : > { %632 = dma.done.wait (%p718_p1), [#allocation6], 2048  }
  0x24   : > { %634 = vsyncadd (%p718_p1), [#allocation6], 4294965248  ;;  %v271_v0 = vld [vmem:[#allocation5 + $0x78] sm:$0xff]  ;;  %v270_v1 = vld [vmem:[#allocation5 + $0x70] sm:$0xff]  ;;  %s436_s19 = sshll.u32 %s653_s15, 3  ;;  %s250_s21 = scalar_lea.vmem [#allocation7], %s432_s30 }
  0x25   : > { %276 = vmatpush.msra.mxu0 %v271_v0  ;;  %v269_v2 = vld [vmem:[#allocation5 + $0x68] sm:$0xff]  ;;  %v268_v3 = vld [vmem:[#allocation5 + $0x60] sm:$0xff]  ;;  %v267_v4 = vld [vmem:[#allocation5 + $0x58] sm:$0xff]  ;;  %s309_s5 = scalar_lea.hbm %s842_s3, %s436_s19  ;;  %s311_s22 = sshll.u32 %s250_s21, 4  ;;  %s312_s22 = int_to_ptr.vmem [resolvable:$true] %s311_s22 }
  0x26   : > { %v266_v5 = vld [vmem:[#allocation5 + $0x50] sm:$0xff]  ;;  %v265_v6 = vld [vmem:[#allocation5 + $0x48] sm:$0xff]  ;;  %v264_v7 = vld [vmem:[#allocation5 + $0x40] sm:$0xff]  ;;  %s313_s18 = sshll.u32 %s309_s5, 4  ;;  %s298_s24 = scalar_lea.sflag [#allocation4], %s779_s28  ;;  %s314_s18 = int_to_ptr.hbm [resolvable:$true] %s313_s18 }
  0x27   : > { %277 = vmatpush.msra.mxu0 %v270_v1  ;;  %v263_v8 = vld [vmem:[#allocation5 + $0x38] sm:$0xff]  ;;  %v262_v9 = vld [vmem:[#allocation5 + $0x30] sm:$0xff]  ;;  %v261_v10 = vld [vmem:[#allocation5 + $0x28] sm:$0xff]  ;;  %s589_s15 = sshra.s32 %s314_s18, 4  ;;  %s595_s6 = scalar_lea.hbm %s842_s3, 16  ;;  %s590_s15 = int_to_ptr.hbm [resolvable:$true] %s589_s15 }
  0x28   : > { %v260_v11 = vld [vmem:[#allocation5 + $0x20] sm:$0xff]  ;;  %v259_v12 = vld [vmem:[#allocation5 + $0x18] sm:$0xff]  ;;  %v258_v13 = vld [vmem:[#allocation5 + $0x10] sm:$0xff]  ;;  %s591_s25 = scalar_lea.hbm %s590_s15, 8  ;;  %p596_p10 = scmp.lt.s32.totalorder %s590_s15, %s842_s3 }
  0x29   : > { %278 = vmatpush.msra.mxu0 %v269_v2  ;;  %v257_v14 = vld [vmem:[#allocation5 + $0x8] sm:$0xff]  ;;  %v256_v15 = vld [vmem:[#allocation5] sm:$0xff]  ;;  %v255_v16 = vld [vmem:[%s785_s11] sm:$0xff]  ;;  %p592_p1 = scmp.ne.s32.totalorder %s590_s15, %s591_s25  ;;  %p597_p11 = scmp.lt.s32.totalorder %s595_s6, %s591_s25 }
  0x2a   : > { %v514_v17 = vld [vmem:[%s841_s2] ss:$0 sm:$0xff] }
  0x2b   : > { %279 = vmatpush.msra.mxu0 %v268_v3  ;;  %p593_p3 = pnand %p592_p1, %p757_p4  ;;  %p598_p12 = por %p597_p11, %p596_p10 }
  0x2d   : > { %280 = vmatpush.msra.mxu0 %v267_v4  ;;  %p594_p9 = pneg %p593_p3 }
  0x2f   : > { %281 = vmatpush.msra.mxu0 %v266_v5  ;;  %p599_p13 = pnand %p598_p12, %p594_p9 }
  0x31   : > { %282 = vmatpush.msra.mxu0 %v265_v6 }
  0x33   : > { %283 = vmatpush.msra.mxu0 %v264_v7 }
  0x35   : > { %284 = vmatpush.msra.mxu0 %v263_v8 }
  0x37   : > { %285 = vmatpush.msra.mxu0 %v262_v9 }
  0x39   : > { %286 = vmatpush.msra.mxu0 %v261_v10 }
  0x3b   : > { %287 = vmatpush.msra.mxu0 %v260_v11 }
  0x3d   : > { %288 = vmatpush.msra.mxu0 %v259_v12 }
  0x3f   : > { %289 = vmatpush.msra.mxu0 %v258_v13 }
  0x41   : > { %290 = vmatpush.msra.mxu0 %v257_v14 }
  0x43   : > { %291 = vmatpush.msra.mxu0 %v256_v15 }
  0x44   : > { %292 = vmatmul.f32.vlgmr.msra.gmra.mxu0 %v255_v16 }
  0xc1   : > { %v293_v18 = vpop.f32.mrf.mxu0 }
  0xc2   : > { %v294_v19 = vadd.f32 %v514_v17, %v293_v18 }
  0xc4   : > { %296 = vst [vmem:[%s250_s21] sm:$0xff] %v294_v19 }
  0xc5   : > { %602 = shalt.err (!%p599_p13)
}
  0xc6   : > { %445 = dma.vmem_to_hbm [thread:$0]  (%p757_p4), %s312_s22, 128, %s314_s18, %s298_s24  }
  0xc7 PF: > { %s325_s28 = sand.u32 1, %s641_s12   ;;  %p456_p0 = pnand %p428_p6, %p765_p7 }
  0xc8   : > { %s326_s19 = scalar_lea.sflag [#allocation4], %s325_s28 }
  0xc9   : > { %p457_p2 = pneg %p456_p0 }
  0xcb   : > { %636 = dma.done.wait (%p457_p2), %s326_s19, 128  }
  0xcc   : > { %638 = vsyncadd (%p457_p2), %s326_s19, 4294967168  ;;  %s20_s17 = sadd.s32 1, %s661_s17   ;;  %s849_s12 = smov %s645_s13 }
  0xcd   : > { %p17_p5 = scmp.ge.s32.totalorder %s20_s17, 4   ;;  %s850_s13 = smov %s649_s14 }
  0xce   : > { %s851_s14 = smov %s763_s8  ;;  %s852_s15 = smov %s657_s16 }
  0xcf   : > { %s853_s16 = smov %s855_s29  ;;  %19 = sbr.rel (!%p17_p5) target bundleno = 7 (0x7), region = 85 }
  0xd4   :  { %332 = vsyncpa [#allocation3], 1 }
  0xd5   :  { %334 = vsyncpa [#allocation3 + $0x1], 1 }
  0xd6   :  { %335 = vsyncpa [#allocation6], 1 }
  0xd7   :  { %336 = vsyncpa [#allocation4], 1 }
  0xd8   :  { %338 = vsyncpa [#allocation4 + $0x1], 1 }

</bundles_post_ra>
